<compile_context>
chip_gen: v5e
topology: v5e:2x2
jax: 0.10.0
libtpu: 0.0.40
codegen_flags: <defaults>
</compile_context>

<pallas_src>
import jax
import jax.numpy as jnp
from jax.experimental import pallas as pl
from jax.experimental.pallas import tpu as pltpu


def _round_up(v, m):
    return -(-v // m) * m


def _cdiv(a, b):
    return -(-a // b)


def hazard_kernel(x_ref, beta_ref, t_ref, y_ref):
    # x_ref:    (TB, F, L)  input dtype (f32 or bf16)
    # beta_ref: (F, L)      input dtype
    # t_ref:    (TB, K)     int32, 1-based time indices
    # y_ref:    (TB, K)     float32
    TB, F, L = x_ref.shape
    K = t_ref.shape[1]

    # Load the whole x tile once; reduce over the feature (sublane) axis with
    # one multiply + sublane reduce.  The reduce runs on the otherwise-idle
    # XLU, keeping the VPU free (v6e has no f32 FMA, so a per-feature mul+add
    # chain costs 2 VALU ops/elem/feature) and avoiding F strided
    # sublane-slice loads / relayouts of the block.
    beta = beta_ref[...].astype(jnp.float32)                 # (F, L)
    xb = x_ref[...].astype(jnp.float32)                      # (TB, F, L)
    x_beta = jnp.sum(xb * beta[None, :, :], axis=1)          # (TB, L) f32

    # Gather along L with per-row dynamic indices as K masked lane-reductions
    # over the (TB, L) tile.  K (number of queried times) is small, so the
    # O(K*L) VPU/XLU work stays below the x-tile DMA time.
    lane = jax.lax.broadcasted_iota(jnp.int32, (TB, L), 1)   # (TB, L)
    tm1 = t_ref[...] - 1                                     # (TB, K) int32
    cols = []
    for k in range(K):
        mask = lane == tm1[:, k:k + 1]                       # (TB, L) bool
        cols.append(
            jnp.sum(jnp.where(mask, x_beta, 0.0), axis=1, keepdims=True))
    # Single store of the full (TB, K) output block.
    y_ref[...] = jnp.concatenate(cols, axis=1)


def _vmem_limit_bytes():
    """Per-generation VMEM budget: ~96 MiB on 128 MiB chips (v5e/v6e),
    ~48 MiB on 64 MiB-per-core chips (v7x). Safe fallback: 48 MiB."""
    try:
        cap = getattr(pltpu.get_tpu_info(), "vmem_capacity_bytes", None)
    except Exception:
        cap = None
    if not cap:
        cap = 64 * 1024 * 1024
    return int(min(max(cap * 3 // 4, 32 * 1024 * 1024), 96 * 1024 * 1024))


def hazard_forward(x, beta, t, *, block_b=None, vmem_limit_bytes=None):
    """x: (B, F, L) f32/bf16, beta: (F, L) f32/bf16, t: (B, K) int -> (B, K) f32."""
    B, F, L = x.shape
    K = t.shape[1]
    t = t.astype(jnp.int32)

    if vmem_limit_bytes is None:
        vmem_limit_bytes = _vmem_limit_bytes()

    # --- Batch tile size: fill ~half the VMEM budget with the pipeline's
    # dominant buffers (the per-grid-step overhead is ~0.35us, so tiny tiles
    # leave most of the HBM bandwidth unused).
    itemsize = jnp.dtype(x.dtype).itemsize
    sub_x = max(8, 32 // itemsize)          # sublane tile of x's dtype
    lane_L = _round_up(L, 128)
    f_pad_x = _round_up(F, sub_x)           # F sits on the sublane axis
    f_pad32 = _round_up(F, 8)
    per_row_bytes = (
        2 * f_pad_x * lane_L * itemsize     # double-buffered x block
        + 2 * f_pad32 * lane_L * 4          # f32 x value + (x*beta) product
        + 6 * lane_L * 4)                   # x_beta + gather temporaries
    if block_b is None:
        budget = vmem_limit_bytes // 2
        block_b = (budget // per_row_bytes) // 8 * 8
        block_b = max(8, min(block_b, 1024))
    else:
        block_b = max(8, _round_up(block_b, 8))

    # Keep >= 2 grid steps when possible so v7x's two TensorCores both get
    # work on the "parallel" batch axis; harmless on single-core v5e/v6e.
    if B > 8:
        block_b = min(block_b, _round_up(_cdiv(B, 2), 8))
    block_b = min(block_b, _round_up(B, 8))

    # Balance tiles so batch padding is < 8 rows per tile.
    nblocks = _cdiv(B, block_b)
    tb = _round_up(_cdiv(B, nblocks), 8)
    b_pad = nblocks * tb

    if b_pad != B:
        x = jnp.pad(x, ((0, b_pad - B), (0, 0), (0, 0)))
        t = jnp.pad(t, ((0, b_pad - B), (0, 0)), constant_values=1)

    y = pl.pallas_call(
        hazard_kernel,
        out_shape=jax.ShapeDtypeStruct((b_pad, K), jnp.float32),
        grid_spec=pltpu.PrefetchScalarGridSpec(
            num_scalar_prefetch=0,
            grid=(nblocks,),
            in_specs=[
                pl.BlockSpec((tb, F, L), lambda b: (b, 0, 0)),   # x batch tile
                pl.BlockSpec((F, L), lambda b: (0, 0)),          # beta (resident)
                pl.BlockSpec((tb, K), lambda b: (b, 0)),         # t batch tile
            ],
            out_specs=pl.BlockSpec((tb, K), lambda b: (b, 0)),
        ),
        compiler_params=pltpu.CompilerParams(
            dimension_semantics=("parallel",),     # megacore split on v7x
            vmem_limit_bytes=vmem_limit_bytes,     # per-generation budget
        ),
    )(x, beta, t)
    return y[:B]


if __name__ == "__main__":
    # Small shapes consistent with the module.
    batch, feature_num, length, n_times = 2, 4, 16, 8

    key = jax.random.PRNGKey(0)
    kx, kb, kt = jax.random.split(key, 3)
    x = jax.random.normal(kx, (batch, feature_num, length), dtype=jnp.float32)
    beta = jax.random.normal(kb, (feature_num, length), dtype=jnp.float32)
    t = jax.random.randint(kt, (batch, n_times), 1, length + 1, dtype=jnp.int32)

    y = jax.block_until_ready(hazard_forward(x, beta, t))

    x_beta_ref = jnp.sum(x * beta[None, :, :], axis=1)
    y_ref = jnp.take_along_axis(x_beta_ref, t - 1, axis=1)
    assert y.shape == (batch, n_times)
    assert jnp.allclose(y, y_ref, atol=1e-5, rtol=1e-5)

    # Larger batch / length: exercises the multi-tile grid + padding path
    # (2 balanced batch tiles of 16 rows for B=20).
    b2, l2 = 20, 256
    kx2, kb2, kt2 = jax.random.split(jax.random.PRNGKey(1), 3)
    x2 = jax.random.normal(kx2, (b2, feature_num, l2), dtype=jnp.float32)
    beta2 = jax.random.normal(kb2, (feature_num, l2), dtype=jnp.float32)
    t2 = jax.random.randint(kt2, (b2, n_times), 1, l2 + 1, dtype=jnp.int32)
    y2 = jax.block_until_ready(hazard_forward(x2, beta2, t2))
    y2_ref = jnp.take_along_axis(jnp.sum(x2 * beta2[None, :, :], axis=1),
                                 t2 - 1, axis=1)
    assert y2.shape == (b2, n_times)
    assert jnp.allclose(y2, y2_ref, atol=1e-5, rtol=1e-5)

    print("KERNEL_OK")
</pallas_src>

<mosaic_0001>
module attributes {stable_mosaic.version = 11 : i64} {
  func.func @hazard_kernel(%arg0: i32, %arg1: memref<8x4x16xf32, #tpu.memory_space<vmem>>, %arg2: memref<4x16xf32, #tpu.memory_space<vmem>>, %arg3: memref<8x8xi32, #tpu.memory_space<vmem>>, %arg4: memref<8x8xf32, #tpu.memory_space<vmem>>) attributes {dimension_semantics = [#tpu.dimension_semantics<parallel>], iteration_bounds = array<i64: 1>, scalar_prefetch = 0 : i64, scratch_operands = 0 : i64, tpu.core_type = #tpu.core_type<tc>, window_params = [{transform_indices = @transform_0, window_bounds = array<i64: 8, 4, 16>}, {pipeline_mode = #tpu.pipeline_mode<synchronous>, transform_indices = @transform_1, window_bounds = array<i64: 4, 16>}, {transform_indices = @transform_2, window_bounds = array<i64: 8, 8>}, {transform_indices = @transform_3, window_bounds = array<i64: 8, 8>}]} {
    %c0 = arith.constant 0 : index
    %c0_0 = arith.constant 0 : index
    %0 = vector.load %arg2[%c0, %c0_0] : memref<4x16xf32, #tpu.memory_space<vmem>>, vector<4x16xf32>
    %c0_1 = arith.constant 0 : index
    %c0_2 = arith.constant 0 : index
    %c0_3 = arith.constant 0 : index
    %1 = vector.load %arg1[%c0_1, %c0_2, %c0_3] : memref<8x4x16xf32, #tpu.memory_space<vmem>>, vector<8x4x16xf32>
    %2 = vector.shape_cast %0 : vector<4x16xf32> to vector<1x4x16xf32>
    %3 = vector.broadcast %2 : vector<1x4x16xf32> to vector<8x4x16xf32>
    %4 = arith.mulf %1, %3 : vector<8x4x16xf32>
    %cst = arith.constant dense<0.000000e+00> : vector<8x16xf32>
    %5 = vector.multi_reduction <add>, %4, %cst [1] : vector<8x4x16xf32> to vector<8x16xf32>
    %6 = tpu.iota {dimensions = array<i32: 1>} : vector<8x16xi32>
    %c0_4 = arith.constant 0 : index
    %c0_5 = arith.constant 0 : index
    %7 = vector.load %arg3[%c0_4, %c0_5] : memref<8x8xi32, #tpu.memory_space<vmem>>, vector<8x8xi32>
    %c1_i32 = arith.constant 1 : i32
    %8 = vector.broadcast %c1_i32 : i32 to vector<8x8xi32>
    %9 = arith.subi %7, %8 : vector<8x8xi32>
    %10 = vector.extract_strided_slice %9 {offsets = [0, 0], sizes = [8, 1], strides = [1, 1]} : vector<8x8xi32> to vector<8x1xi32>
    %11 = vector.broadcast %10 : vector<8x1xi32> to vector<8x16xi32>
    %12 = arith.cmpi eq, %6, %11 : vector<8x16xi32>
    %cst_6 = arith.constant 0.000000e+00 : f32
    %13 = vector.broadcast %cst_6 : f32 to vector<8x16xf32>
    %14 = arith.select %12, %5, %13 : vector<8x16xi1>, vector<8x16xf32>
    %cst_7 = arith.constant dense<0.000000e+00> : vector<8xf32>
    %15 = vector.multi_reduction <add>, %14, %cst_7 [1] : vector<8x16xf32> to vector<8xf32>
    %16 = vector.shape_cast %15 : vector<8xf32> to vector<8x1xf32>
    %17 = vector.extract_strided_slice %9 {offsets = [0, 1], sizes = [8, 1], strides = [1, 1]} : vector<8x8xi32> to vector<8x1xi32>
    %18 = vector.broadcast %17 : vector<8x1xi32> to vector<8x16xi32>
    %19 = arith.cmpi eq, %6, %18 : vector<8x16xi32>
    %cst_8 = arith.constant 0.000000e+00 : f32
    %20 = vector.broadcast %cst_8 : f32 to vector<8x16xf32>
    %21 = arith.select %19, %5, %20 : vector<8x16xi1>, vector<8x16xf32>
    %cst_9 = arith.constant dense<0.000000e+00> : vector<8xf32>
    %22 = vector.multi_reduction <add>, %21, %cst_9 [1] : vector<8x16xf32> to vector<8xf32>
    %23 = vector.shape_cast %22 : vector<8xf32> to vector<8x1xf32>
    %24 = vector.extract_strided_slice %9 {offsets = [0, 2], sizes = [8, 1], strides = [1, 1]} : vector<8x8xi32> to vector<8x1xi32>
    %25 = vector.broadcast %24 : vector<8x1xi32> to vector<8x16xi32>
    %26 = arith.cmpi eq, %6, %25 : vector<8x16xi32>
    %cst_10 = arith.constant 0.000000e+00 : f32
    %27 = vector.broadcast %cst_10 : f32 to vector<8x16xf32>
    %28 = arith.select %26, %5, %27 : vector<8x16xi1>, vector<8x16xf32>
    %cst_11 = arith.constant dense<0.000000e+00> : vector<8xf32>
    %29 = vector.multi_reduction <add>, %28, %cst_11 [1] : vector<8x16xf32> to vector<8xf32>
    %30 = vector.shape_cast %29 : vector<8xf32> to vector<8x1xf32>
    %31 = vector.extract_strided_slice %9 {offsets = [0, 3], sizes = [8, 1], strides = [1, 1]} : vector<8x8xi32> to vector<8x1xi32>
    %32 = vector.broadcast %31 : vector<8x1xi32> to vector<8x16xi32>
    %33 = arith.cmpi eq, %6, %32 : vector<8x16xi32>
    %cst_12 = arith.constant 0.000000e+00 : f32
    %34 = vector.broadcast %cst_12 : f32 to vector<8x16xf32>
    %35 = arith.select %33, %5, %34 : vector<8x16xi1>, vector<8x16xf32>
    %cst_13 = arith.constant dense<0.000000e+00> : vector<8xf32>
    %36 = vector.multi_reduction <add>, %35, %cst_13 [1] : vector<8x16xf32> to vector<8xf32>
    %37 = vector.shape_cast %36 : vector<8xf32> to vector<8x1xf32>
    %38 = vector.extract_strided_slice %9 {offsets = [0, 4], sizes = [8, 1], strides = [1, 1]} : vector<8x8xi32> to vector<8x1xi32>
    %39 = vector.broadcast %38 : vector<8x1xi32> to vector<8x16xi32>
    %40 = arith.cmpi eq, %6, %39 : vector<8x16xi32>
    %cst_14 = arith.constant 0.000000e+00 : f32
    %41 = vector.broadcast %cst_14 : f32 to vector<8x16xf32>
    %42 = arith.select %40, %5, %41 : vector<8x16xi1>, vector<8x16xf32>
    %cst_15 = arith.constant dense<0.000000e+00> : vector<8xf32>
    %43 = vector.multi_reduction <add>, %42, %cst_15 [1] : vector<8x16xf32> to vector<8xf32>
    %44 = vector.shape_cast %43 : vector<8xf32> to vector<8x1xf32>
    %45 = vector.extract_strided_slice %9 {offsets = [0, 5], sizes = [8, 1], strides = [1, 1]} : vector<8x8xi32> to vector<8x1xi32>
    %46 = vector.broadcast %45 : vector<8x1xi32> to vector<8x16xi32>
    %47 = arith.cmpi eq, %6, %46 : vector<8x16xi32>
    %cst_16 = arith.constant 0.000000e+00 : f32
    %48 = vector.broadcast %cst_16 : f32 to vector<8x16xf32>
    %49 = arith.select %47, %5, %48 : vector<8x16xi1>, vector<8x16xf32>
    %cst_17 = arith.constant dense<0.000000e+00> : vector<8xf32>
    %50 = vector.multi_reduction <add>, %49, %cst_17 [1] : vector<8x16xf32> to vector<8xf32>
    %51 = vector.shape_cast %50 : vector<8xf32> to vector<8x1xf32>
    %52 = vector.extract_strided_slice %9 {offsets = [0, 6], sizes = [8, 1], strides = [1, 1]} : vector<8x8xi32> to vector<8x1xi32>
    %53 = vector.broadcast %52 : vector<8x1xi32> to vector<8x16xi32>
    %54 = arith.cmpi eq, %6, %53 : vector<8x16xi32>
    %cst_18 = arith.constant 0.000000e+00 : f32
    %55 = vector.broadcast %cst_18 : f32 to vector<8x16xf32>
    %56 = arith.select %54, %5, %55 : vector<8x16xi1>, vector<8x16xf32>
    %cst_19 = arith.constant dense<0.000000e+00> : vector<8xf32>
    %57 = vector.multi_reduction <add>, %56, %cst_19 [1] : vector<8x16xf32> to vector<8xf32>
    %58 = vector.shape_cast %57 : vector<8xf32> to vector<8x1xf32>
    %59 = vector.extract_strided_slice %9 {offsets = [0, 7], sizes = [8, 1], strides = [1, 1]} : vector<8x8xi32> to vector<8x1xi32>
    %60 = vector.broadcast %59 : vector<8x1xi32> to vector<8x16xi32>
    %61 = arith.cmpi eq, %6, %60 : vector<8x16xi32>
    %cst_20 = arith.constant 0.000000e+00 : f32
    %62 = vector.broadcast %cst_20 : f32 to vector<8x16xf32>
    %63 = arith.select %61, %5, %62 : vector<8x16xi1>, vector<8x16xf32>
    %cst_21 = arith.constant dense<0.000000e+00> : vector<8xf32>
    %64 = vector.multi_reduction <add>, %63, %cst_21 [1] : vector<8x16xf32> to vector<8xf32>
    %65 = vector.shape_cast %64 : vector<8xf32> to vector<8x1xf32>
    %66 = tpu.concatenate %16, %23, %30, %37, %44, %51, %58, %65 in 1 : vector<8x1xf32>, vector<8x1xf32>, vector<8x1xf32>, vector<8x1xf32>, vector<8x1xf32>, vector<8x1xf32>, vector<8x1xf32>, vector<8x1xf32> -> vector<8x8xf32>
    %c0_22 = arith.constant 0 : index
    %c0_23 = arith.constant 0 : index
    %67 = vector.load %arg4[%c0_22, %c0_23] : memref<8x8xf32, #tpu.memory_space<vmem>>, vector<8x8xf32>
    tpu.vector_store %arg4[%c0_22, %c0_23], %66 {strides = array<i32>} : memref<8x8xf32, #tpu.memory_space<vmem>>, vector<8x8xf32>,
    return
  }
  func.func @transform_0(%arg0: i32) -> (i32, i32, i32) {
    %c0_i32 = arith.constant 0 : i32
    %c0_i32_0 = arith.constant 0 : i32
    %c0_i32_1 = arith.constant 0 : i32
    return %arg0, %c0_i32, %c0_i32_0 : i32, i32, i32
  }
  func.func @transform_1(%arg0: i32) -> (i32, i32) {
    %c0_i32 = arith.constant 0 : i32
    %c0_i32_0 = arith.constant 0 : i32
    %c0_i32_1 = arith.constant 0 : i32
    return %c0_i32, %c0_i32_0 : i32, i32
  }
  func.func @transform_2(%arg0: i32) -> (i32, i32) {
    %c0_i32 = arith.constant 0 : i32
    %c0_i32_0 = arith.constant 0 : i32
    return %arg0, %c0_i32 : i32, i32
  }
  func.func @transform_3(%arg0: i32) -> (i32, i32) {
    %c0_i32 = arith.constant 0 : i32
    %c0_i32_0 = arith.constant 0 : i32
    return %arg0, %c0_i32 : i32, i32
  }
}

</mosaic_0001>

<bundles_post_ra>
// kernel: tpu_custom_call.1
= control target key start
LH: loop header
LB: loop body
LE: loop exit
PB: predicated region body
PF: predicated region fallthrough
CT: control target
= control target key end

     0   :  { %8 = vsyncpa [#allocation3], 0  ;;  %s446_s0 = inlined_call_operand.hbm [shape: f32[8,4,16], index: 0, kind: input, shape index: {}]   ;;  %s447_s1 = inlined_call_operand.hbm [shape: f32[4,16], index: 1, kind: input, shape index: {}]   ;;  %s448_s2 = inlined_call_operand.hbm [shape: s32[8,8], index: 2, kind: input, shape index: {}]   ;;  %s449_s3 = inlined_call_operand.hbm [shape: f32[8,8], index: 3, kind: output, shape index: {}]  }
   0x1   :  { %9 = vsyncpa [#allocation6], 0  ;;  %s29_s14 = sshll.u32 %s447_s1, 4  ;;  %s30_s14 = int_to_ptr.hbm [resolvable:$true] %s29_s14 }
   0x2   :  { %10 = vsyncpa [#allocation4], 0  ;;  %s384_s15 = smov [#allocation5]   ;;  %s15_s19 = sshll.u32 %s446_s0, 4  ;;  %s16_s19 = int_to_ptr.hbm [resolvable:$true] %s15_s19 }
   0x3   :  { %s31_s16 = sshll.u32 %s384_s15, 4  ;;  %s385_s20 = smov [#allocation2]   ;;  %s32_s16 = int_to_ptr.vmem [resolvable:$true] %s31_s16 }
   0x4   :  { %34 = dma.hbm_to_vmem [thread:$0]  %s30_s14, 64, %s32_s16, [#allocation6]  }
   0x5   :  { %s17_s21 = sshll.u32 %s385_s20, 4  ;;  %s386_s22 = smov 64   ;;  %s18_s21 = int_to_ptr.vmem [resolvable:$true] %s17_s21 }
   0x6   :  { %s387_s23 = smov 4   ;;  %s40_s1 = sshll.u32 %s448_s2, 4  ;;  %s41_s1 = int_to_ptr.hbm [resolvable:$true] %s40_s1 }
   0x7   :  { %23 = dma.hbm_to_vmem [thread:$0]  %s16_s19, 512, %s18_s21, [#allocation3], %s386_s22, %s386_s22, %s387_s23  }
   0x8   :  { %s388_s26 = smov [#allocation7]  }
   0x9   :  { %s42_s27 = sshll.u32 %s388_s26, 4  ;;  %s43_s27 = int_to_ptr.vmem [resolvable:$true] %s42_s27 }
   0xa   :  { %45 = dma.hbm_to_vmem [thread:$0]  %s41_s1, 128, %s43_s27, [#allocation6]  }
   0xb   :  { %378 = dma.done.wait [#allocation3], 512  }
   0xc   :  { %379 = vsyncadd [#allocation3], 4294966784 }
   0xd   :  { %380 = dma.done.wait [#allocation6], 192  }
   0xe   :  { %381 = vsyncadd [#allocation6], 4294967104  ;;  %v389_v0 = vmov 1   ;;  %v390_v1 = vmov 0   ;;  %v391_v2 = vmov 2   ;;  %v134_v3 = vld [vmem:[#allocation7] sm:$0xff] }
   0xf   :  { %274 = vset.pattern.permute.xlu1 %v389_v0  ;;  %273 = vset.pattern.permute.xlu0 %v390_v1  ;;  %v258_v4 = vadd.s32 4294967295, %v134_v3  ;;  %v392_v5 = vmov 4   ;;  %v393_v6 = vmov 5   ;;  %v394_v7 = vmov 3   ;;  %v58_v10 = vld [vmem:[#allocation5] sm:$0xf] }
  0x10   :  { %275 = vset.pattern.permute.xlu2 %v391_v2  ;;  %v395_v8 = vmov 7   ;;  %v396_v9 = vmov 6   ;;  %v59_v11 = vld [vmem:[#allocation2] sm:$0xf]  ;;  %v60_v12 = vld [vmem:[#allocation2 + $0x4] sm:$0xf] }
  0x11   :  { %169 = vperm.xlu1 %274, %v258_v4   ;;  %137 = vperm.xlu0 %273, %v258_v4   ;;  %v61_v13 = vld [vmem:[#allocation2 + $0x8] sm:$0xf]  ;;  %v67_v14 = vmul.f32 %v59_v11, %v58_v10  ;;  %v68_v15 = vmul.f32 %v60_v12, %v58_v10  ;;  %v62_v16 = vld [vmem:[#allocation2 + $0xc] sm:$0xf]  ;;  %vm75_vm0 = vcmask 125952   ;;  %vm148_vm1 = vcmask 1041409  }
  0x12   :  { %177 = vperm.xlu2 %275, %v258_v4   ;;  %v69_v17 = vmul.f32 %v61_v13, %v58_v10  ;;  %v63_v18 = vld [vmem:[#allocation2 + $0x10] sm:$0xf]  ;;  %v70_v19 = vmul.f32 %v62_v16, %v58_v10  ;;  %v64_v22 = vld [vmem:[#allocation2 + $0x14] sm:$0xf]  ;;  %v65_v27 = vld [vmem:[#allocation2 + $0x18] sm:$0xf] }
  0x13   :  { %v76_v20 = vsel %vm75_vm0, %v67_v14, 0.0  ;;  %v83_v21 = vsel %vm75_vm0, %v68_v15, 0.0  ;;  %v71_v23 = vmul.f32 %v63_v18, %v58_v10  ;;  %v72_v28 = vmul.f32 %v64_v22, %v58_v10  ;;  %v66_v31 = vld [vmem:[#allocation2 + $0x1c] sm:$0xf]  ;;  %s397_s0 = smov [#allocation8]   ;;  %s247_s30 = sshll.u32 %s449_s3, 4  ;;  %s248_s30 = int_to_ptr.hbm [resolvable:$true] %s247_s30 }
  0x14   :  { %v77_v24 = vrot.slane %v76_v20, 4  ;;  %v84_v25 = vrot.slane %v83_v21, 4  ;;  %v90_v26 = vsel %vm75_vm0, %v69_v17, 0.0  ;;  %v97_v30 = vsel %vm75_vm0, %v70_v19, 0.0  ;;  %s245_s2 = sshll.u32 %s397_s0, 4  ;;  %s246_s2 = int_to_ptr.vmem [resolvable:$true] %s245_s2 }
  0x15   :  { %v91_v29 = vrot.slane %v90_v26, 4  ;;  %v73_v32 = vmul.f32 %v65_v27, %v58_v10  ;;  %v98_v35 = vrot.slane %v97_v30, 4  ;;  %v74_v36 = vmul.f32 %v66_v31, %v58_v10 }
  0x16   :  { %v78_v33 = vadd.f32 %v77_v24, %v76_v20  ;;  %v85_v34 = vadd.f32 %v84_v25, %v83_v21  ;;  %v104_v38 = vsel %vm75_vm0, %v71_v23, 0.0  ;;  %v111_v39 = vsel %vm75_vm0, %v72_v28, 0.0 }
  0x17   :  { %v92_v37 = vadd.f32 %v91_v29, %v90_v26  ;;  %v99_v42 = vadd.f32 %v98_v35, %v97_v30  ;;  %v105_v43 = vrot.slane %v104_v38, 4  ;;  %v112_v45 = vrot.slane %v111_v39, 4 }
  0x18   :  { %v79_v40 = vrot.slane %v78_v33, 2  ;;  %v86_v41 = vrot.slane %v85_v34, 2  ;;  %v118_v46 = vsel %vm75_vm0, %v73_v32, 0.0  ;;  %v125_v47 = vsel %vm75_vm0, %v74_v36, 0.0 }
  0x19   :  { %277 = vset.pattern.permute.xlu1 %v392_v5  ;;  %278 = vset.pattern.permute.xlu0 %v393_v6  ;;  %v93_v44 = vrot.slane %v92_v37, 2  ;;  %v100_v50 = vrot.slane %v99_v42, 2  ;;  %v106_v51 = vadd.f32 %v105_v43, %v104_v38  ;;  %v113_v53 = vadd.f32 %v112_v45, %v111_v39 }
  0x1a   :  { %193 = vperm.xlu1 %277, %v258_v4   ;;  %201 = vperm.xlu0 %278, %v258_v4   ;;  %v80_v48 = vadd.f32 %v79_v40, %v78_v33  ;;  %v87_v49 = vadd.f32 %v86_v41, %v85_v34  ;;  %v119_v54 = vrot.slane %v118_v46, 4  ;;  %v126_v55 = vrot.slane %v125_v47, 4 }
  0x1b   :  { %276 = vset.pattern.permute.xlu2 %v394_v7  ;;  %v94_v52 = vadd.f32 %v93_v44, %v92_v37  ;;  %v101_v58 = vadd.f32 %v100_v50, %v99_v42  ;;  %v107_v59 = vrot.slane %v106_v51, 2  ;;  %v114_v61 = vrot.slane %v113_v53, 2 }
  0x1c   :  { %185 = vperm.xlu2 %276, %v258_v4   ;;  %v81_v56 = vrot.slane %v80_v48, 1  ;;  %v88_v57 = vrot.slane %v87_v49, 1  ;;  %v120_v62 = vadd.f32 %v119_v54, %v118_v46  ;;  %v127_v63 = vadd.f32 %v126_v55, %v125_v47 }
  0x1d   :  { %v95_v60 = vrot.slane %v94_v52, 1  ;;  %v102_v2 = vrot.slane %v101_v58, 1  ;;  %v108_v3 = vadd.f32 %v107_v59, %v106_v51  ;;  %v115_v5 = vadd.f32 %v114_v61, %v113_v53 }
  0x1e   :  { %v82_v0 = vadd.f32 %v81_v56, %v80_v48  ;;  %v89_v1 = vadd.f32 %v88_v57, %v87_v49  ;;  %v121_v6 = vrot.slane %v120_v62, 2  ;;  %v128_v7 = vrot.slane %v127_v63, 2 }
  0x1f   :  { %vm150_vm2 = vcmask 1042434   ;;  %v116_v10 = vrot.slane %v115_v5, 1  ;;  %vm152_vm3 = vcmask 1043459   ;;  %vm154_vm4 = vcmask 1044484  }
  0x20   :  { %v122_v11 = vadd.f32 %v121_v6, %v120_v62  ;;  %v129_v12 = vadd.f32 %v128_v7, %v127_v63  ;;  %v149_v13 = vsel %vm148_vm1, %v89_v1, %v82_v0  ;;  %vm156_vm5 = vcmask 1045509  }
  0x21   :  { %v117_v18 = vadd.f32 %v116_v10, %v115_v5  ;;  %v132_v22 = vlaneseq  ;;  %vm158_vm6 = vcmask 1046534   ;;  %vm160_vm7 = vcmask 1047559  }
  0x22   :  { %280 = vset.pattern.permute.xlu1 %v395_v8  ;;  %281 = vset.pattern.permute.xlu0 %v395_v8  ;;  %v103_v8 = vadd.f32 %v102_v2, %v101_v58  ;;  %v123_v16 = vrot.slane %v122_v11, 1  ;;  %v130_v20 = vrot.slane %v129_v12, 1  ;;  %vm164_vm8 = vcmask 130048  }
  0x23   :  { %217 = vperm.xlu1 %280, %v258_v4   ;;  %v133_v26 = vand.u32 127, %v132_v22  ;;  %vm224_vm1 = vcmask 7168  }
  0x24   :  { %279 = vset.pattern.permute.xlu2 %v396_v9  ;;  %v109_v9 = vrot.slane %v108_v3, 1  ;;  %v124_v21 = vadd.f32 %v123_v16, %v122_v11  ;;  %v131_v24 = vadd.f32 %v130_v20, %v129_v12 }
  0x25   :  { %209 = vperm.xlu2 %279, %v258_v4   ;;  %v96_v4 = vadd.f32 %v95_v60, %v94_v52 }
  0x26   :  { %v110_v14 = vadd.f32 %v109_v9, %v108_v3 }
  0x27   :  { %v151_v15 = vsel %vm150_vm2, %v96_v4, %v149_v13  ;;  %vm226_vm2 = vcmask 15360  }
  0x28   :  { %v153_v17 = vsel %vm152_vm3, %v103_v8, %v151_v15  ;;  %vm228_vm3 = vcmask 23552  }
  0x29   :  { %v155_v19 = vsel %vm154_vm4, %v110_v14, %v153_v17  ;;  %vm230_vm4 = vcmask 31744  }
  0x2a   :  { %v157_v23 = vsel %vm156_vm5, %v117_v18, %v155_v19  ;;  %vm232_vm5 = vcmask 39936  }
  0x2b   :  { %v159_v25 = vsel %vm158_vm6, %v124_v21, %v157_v23  ;;  %vm234_vm6 = vcmask 48128  }
  0x2c   :  { %v161_v27 = vsel %vm160_vm7, %v131_v24, %v159_v25  ;;  %vm236_vm7 = vcmask 56320  }
  0x6c   :  { %v178_v28 = vpop.permute.xlu2 %177 }
  0x6d   :  { %vm179_vm9 = vcmp.eq.s32.totalorder %v133_v26, %v178_v28 }
  0x6e   :  { %v180_v29 = vsel %vm179_vm9, %v161_v27, 0.0 }
  0x6f   :  { %v181_v30 = vsel %vm164_vm8, %v180_v29, 0.0 }
  0x70   :  { %182 = vadd.xlane.f32.xlu2 %v181_v30 }
  0x76   :  { %v186_v31 = vpop.permute.xlu2 %185 }
  0x77   :  { %vm187_vm12 = vcmp.eq.s32.totalorder %v133_v26, %v186_v31 }
  0x78   :  { %v188_v39 = vsel %vm187_vm12, %v161_v27, 0.0 }
  0x79   :  { %v189_v41 = vsel %vm164_vm8, %v188_v39, 0.0 }
  0x7f   :  { %v210_v32 = vpop.permute.xlu2 %209 }
  0x80   :  { %vm211_vm13 = vcmp.eq.s32.totalorder %v133_v26, %v210_v32 }
  0x81   :  { %v212_v40 = vsel %vm211_vm13, %v161_v27, 0.0 }
  0x82   :  { %v213_v44 = vsel %vm164_vm8, %v212_v40, 0.0 }
  0x83   :  { %v170_v33 = vpop.permute.xlu1 %169  ;;  %v138_v34 = vpop.permute.xlu0 %137 }
  0x84   :  { %vm171_vm10 = vcmp.eq.s32.totalorder %v133_v26, %v170_v33  ;;  %vm139_vm11 = vcmp.eq.s32.totalorder %v133_v26, %v138_v34 }
  0x85   :  { %v172_v35 = vsel %vm171_vm10, %v161_v27, 0.0  ;;  %v163_v36 = vsel %vm139_vm11, %v161_v27, 0.0 }
  0x86   :  { %v173_v37 = vsel %vm164_vm8, %v172_v35, 0.0  ;;  %v165_v38 = vsel %vm164_vm8, %v163_v36, 0.0 }
  0x87   :  { %174 = vadd.xlane.f32.xlu1 %v173_v37  ;;  %166 = vadd.xlane.f32.xlu0 %v165_v38 }
  0x8c   :  { %v194_v42 = vpop.permute.xlu1 %193  ;;  %v202_v43 = vpop.permute.xlu0 %201 }
  0x8d   :  { %vm203_vm14 = vcmp.eq.s32.totalorder %v133_v26, %v202_v43  ;;  %vm195_vm15 = vcmp.eq.s32.totalorder %v133_v26, %v194_v42 }
  0x8e   :  { %v204_v45 = vsel %vm203_vm14, %v161_v27, 0.0  ;;  %v196_v47 = vsel %vm195_vm15, %v161_v27, 0.0 }
  0x8f   :  { %190 = vadd.xlane.f32.xlu0 %v189_v41  ;;  %v205_v46 = vsel %vm164_vm8, %v204_v45, 0.0  ;;  %214 = vadd.xlane.f32.xlu1 %v213_v44  ;;  %v197_v48 = vsel %vm164_vm8, %v196_v47, 0.0 }
  0x90   :  { %206 = vadd.xlane.f32.xlu2 %v205_v46 }
  0x95   :  { %v218_v49 = vpop.permute.xlu1 %217 }
  0x96   :  { %vm219_vm0 = vcmp.eq.s32.totalorder %v133_v26, %v218_v49 }
  0x97   :  { %198 = vadd.xlane.f32.xlu0 %v197_v48  ;;  %v220_v50 = vsel %vm219_vm0, %v161_v27, 0.0 }
  0x98   :  { %v221_v51 = vsel %vm164_vm8, %v220_v50, 0.0  ;;  %vm238_vm8 = vcmask 64512  }
  0x9f   :  { %222 = vadd.xlane.f32.xlu0 %v221_v51 }
  0xe3   :  { %v183_v54 = vpop.xlane.xlu2 %182 }
  0xfa   :  { %v167_v52 = vpop.xlane.xlu0 %166  ;;  %v175_v55 = vpop.xlane.xlu1 %174 }
  0xfb   :  { %v225_v56 = vsel %vm224_vm1, %v167_v52, %v175_v55 }
  0xfc   :  { %v227_v57 = vsel %vm226_vm2, %v225_v56, %v183_v54 }
 0x102   :  { %v191_v53 = vpop.xlane.xlu0 %190  ;;  %v215_v63 = vpop.xlane.xlu1 %214 }
 0x103   :  { %v229_v59 = vsel %vm228_vm3, %v227_v57, %v191_v53  ;;  %v207_v61 = vpop.xlane.xlu2 %206 }
 0x10a   :  { %v199_v58 = vpop.xlane.xlu0 %198 }
 0x10b   :  { %v231_v60 = vsel %vm230_vm4, %v229_v59, %v199_v58 }
 0x10c   :  { %v233_v62 = vsel %vm232_vm5, %v231_v60, %v207_v61 }
 0x10d   :  { %v235_v0 = vsel %vm234_vm6, %v233_v62, %v215_v63 }
 0x112   :  { %v223_v1 = vpop.xlane.xlu0 %222 }
 0x113   :  { %v237_v2 = vsel %vm236_vm7, %v235_v0, %v223_v1 }
 0x114   :  { %239 = vst.msk [vmem:[#allocation8] sm:$0xff] %vm238_vm8, %v237_v2 }
 0x115   :  { %250 = dma.vmem_to_hbm [thread:$0]  %s246_s2, 128, %s248_s30, [#allocation4]  }
 0x116   :  { %382 = dma.done.wait [#allocation4], 128  }
 0x117   :  { %383 = vsyncadd [#allocation4], 4294967168 }
 0x118   :  { %255 = vsyncpa [#allocation3], 1 }
 0x119   :  { %256 = vsyncpa [#allocation6], 1 }
 0x11a   :  { %257 = vsyncpa [#allocation4], 1 }

</bundles_post_ra>
